<compile_context>
chip_gen: v6e
topology: v6e:2x2x1
jax: 0.10.0
libtpu: 0.0.40
codegen_flags: <defaults>
</compile_context>

<pallas_src>
import functools

import jax
import jax.numpy as jnp
from jax.experimental import pallas as pl
from jax.experimental.pallas import tpu as pltpu


# ----------------------------- Pallas kernel --------------------------------
def _volterra_kernel(coords_ref, xc_ref, w_ref, out_ref, feat_ref, *,
                     cin, offsets, H, W):
    # coords_ref: (2, T) int32   per-pixel (y, x) within the H*W image
    # xc_ref:     (n_shifts*cin, T) f32   circularly shifted input maps
    # w_ref:      (Cout, K_pad)  compute-dtype packed weights
    # out_ref:    (Cout, T)      f32
    # feat_ref:   (K_pad, T)     compute-dtype VMEM scratch (fused contraction slab)
    tile = out_ref.shape[-1]
    slab_dtype = feat_ref.dtype
    n_shifts = len(offsets)
    tap_rows = n_shifts * cin
    n_pairs = n_shifts * (n_shifts + 1) // 2
    base_rows = tap_rows + n_pairs * cin
    const_rows = feat_ref.shape[0] - base_rows

    py = coords_ref[0:1, :]                      # (1, T) pixel row
    px = coords_ref[1:2, :]                      # (1, T) pixel col

    # ---- F1 taps: zero-padded KxK conv taps = border-mask * circular shift.
    # Shift (dy, dx) realizes the tap reading x[y - dy, x - dx]; it is valid
    # iff that source pixel lies inside the image.
    for s, (dy, dx) in enumerate(offsets):
        m = (py >= dy) & (py < dy + H) & (px >= dx) & (px < dx + W)
        tap = jnp.where(m, xc_ref[pl.ds(s * cin, cin), :], 0.0)
        feat_ref[pl.ds(s * cin, cin), :] = tap.astype(slab_dtype)

    # ---- F2 features: unique pairwise products, one shift-diagonal at a time.
    # Diagonal d holds pairs (i, i+d); both operands are contiguous row blocks,
    # so each multiply/store is a big, full-width vector op (no masked stores).
    row = tap_rows
    for d in range(n_shifts):
        ln = (n_shifts - d) * cin
        prod = xc_ref[pl.ds(0, ln), :] * xc_ref[pl.ds(d * cin, ln), :]
        feat_ref[pl.ds(row, ln), :] = prod.astype(slab_dtype)
        row += ln

    # ---- constant rows: bias (folded into packed weights) + alignment pad.
    feat_ref[pl.ds(base_rows, const_rows), :] = jnp.ones(
        (const_rows, tile), slab_dtype)

    # ---- single fused MXU matmul: (Cout, K_pad) @ (K_pad, T), f32 accumulation.
    out_ref[...] = jnp.dot(w_ref[...], feat_ref[...],
                           preferred_element_type=jnp.float32
                           ).astype(out_ref.dtype)


# ------------------------------ tile picker ----------------------------------
def _pick_tile(hw_pad, n_batch, cap=8192):
    """Largest lane-dense (multiple-of-128) divisor of hw_pad, capped for VMEM,
    then halved while possible so the (batch, tile) grid has an even step
    count >= 2 (keeps both v7x TensorCores busy and balanced)."""
    best = 128
    t = 128
    while t <= min(hw_pad, cap):
        if hw_pad % t == 0:
            best = t
        t += 128

    def steps(tl):
        return n_batch * (hw_pad // tl)

    while best > 128 and best % 256 == 0 and (steps(best) < 2 or steps(best) % 2):
        best //= 2
    return best


# ------------------------------- wrapper -------------------------------------
@functools.partial(jax.jit,
                   static_argnames=("kernel_size", "shift_radius", "compute_dtype"))
def volterra_layer_2d(x, params, *, kernel_size=3, shift_radius=1,
                      compute_dtype=jnp.bfloat16):
    """x: (N, Cin, H, W) float32 NCHW (PyTorch layout). Returns (N, Cout, H, W)."""
    N, Cin, H, W = x.shape
    w1, b1 = params["w1"], params["b1"]              # (Cout,Cin,k,k), (Cout,)
    w2a, b2a = params["w2a"], params["b2a"]          # (S2,r,Cout,Cin), (S2,r,Cout)
    w2b, b2b = params["w2b"], params["b2b"]          # (S2,r,Cout,Cout), (S2,r,Cout)
    Cout = w1.shape[0]
    HW = H * W
    pad = kernel_size // 2
    # conv taps must be derivable from the circular-shift set (default 3x3, r=1)
    assert pad <= shift_radius

    offsets = tuple((dy, dx) for dy in range(-shift_radius, shift_radius + 1)
                    for dx in range(-shift_radius, shift_radius + 1))
    n_shifts = len(offsets)
    diag_pairs = [(i, i + d) for d in range(n_shifts) for i in range(n_shifts - d)]
    n_pairs = len(diag_pairs)
    scale = 1.0 / float(n_shifts * n_shifts)
    hi = jax.lax.Precision.HIGHEST

    # ---- shifted maps: (N, S*Cin, HW); no transpose of the 9x-expanded data ----
    rolled = jnp.stack([jnp.roll(x, (dy, dx), axis=(2, 3)) for (dy, dx) in offsets],
                       axis=1)                                    # (N,S,Cin,H,W)
    xc = rolled.reshape(N, n_shifts * Cin, HW).astype(jnp.float32)

    hw_pad = ((HW + 127) // 128) * 128                # keep output stores lane-dense
    if hw_pad != HW:
        xc = jnp.pad(xc, ((0, 0), (0, 0), (0, hw_pad - HW)))

    # ---- tiny per-pixel coordinate map (replaces the (n_taps, N*HW) mask input) ----
    ys = jnp.repeat(jnp.arange(H, dtype=jnp.int32), W)
    xs = jnp.tile(jnp.arange(W, dtype=jnp.int32), H)
    coords = jnp.stack([ys, xs], axis=0)                          # (2, HW)
    if hw_pad != HW:
        coords = jnp.pad(coords, ((0, 0), (0, hw_pad - HW)))

    # ---- packed weights: [conv taps (shift order) | folded quad pairs | bias | 0] ----
    # F1: shift (dy,dx) realizes tap (ky,kx) = (pad-dy, pad-dx) when inside the kernel.
    tap_cols = []
    for (dy, dx) in offsets:
        if abs(dy) <= pad and abs(dx) <= pad:
            tap_cols.append(w1[:, :, pad - dy, pad - dx])         # (Cout, Cin)
        else:
            tap_cols.append(jnp.zeros((Cout, Cin), w1.dtype))
    w1p = jnp.stack(tap_cols, axis=1).reshape(Cout, n_shifts * Cin)

    # F2: compose the two 1x1 convs (sum over rank); fold the symmetric partner
    # (x_i*x_j == x_j*x_i) and the 1/81 scale into the weights (diagonal order).
    w2c = jnp.einsum("srij,srjk->sik", w2b, w2a, precision=hi)
    w2c = w2c.reshape(n_shifts, n_shifts, Cout, Cin)
    wsym = jnp.stack([w2c[i, j] if i == j else w2c[i, j] + w2c[j, i]
                      for (i, j) in diag_pairs], axis=1)          # (Cout,n_pairs,Cin)
    w2p = (scale * wsym).reshape(Cout, n_pairs * Cin)

    # bias: conv bias + scaled total quadratic-path bias, folded onto a ones row.
    b2tot = jnp.einsum("srij,srj->i", w2b, b2a, precision=hi) + b2b.sum(axis=(0, 1))
    btot = (b1 + scale * b2tot)[:, None]                          # (Cout, 1)

    base_rows = (n_shifts + n_pairs) * Cin
    k_rows = ((base_rows + 1 + 15) // 16) * 16                    # sublane-aligned slab
    wpack = jnp.concatenate(
        [w1p, w2p, btot,
         jnp.zeros((Cout, k_rows - base_rows - 1), jnp.float32)],
        axis=1).astype(compute_dtype)                             # (Cout, k_rows)

    # ---- grid: (batch, lane-dense pixel tiles) ----
    tile = _pick_tile(hw_pad, N)
    grid = (N, hw_pad // tile)

    kernel = functools.partial(_volterra_kernel, cin=Cin, offsets=offsets, H=H, W=W)

    out = pl.pallas_call(
        kernel,
        out_shape=jax.ShapeDtypeStruct((N, Cout, hw_pad), jnp.float32),
        grid=grid,
        in_specs=[
            pl.BlockSpec((2, tile), lambda n, t: (0, t)),
            pl.BlockSpec((None, n_shifts * Cin, tile), lambda n, t: (n, 0, t)),
            pl.BlockSpec((Cout, k_rows), lambda n, t: (0, 0)),
        ],
        out_specs=pl.BlockSpec((None, Cout, tile), lambda n, t: (n, 0, t)),
        scratch_shapes=[pltpu.VMEM((k_rows, tile), compute_dtype)],
        compiler_params=pltpu.CompilerParams(
            dimension_semantics=("parallel", "parallel"),
            vmem_limit_bytes=48 * 1024 * 1024,
        ),
    )(coords, xc, wpack)

    # no transpose needed: batch/channel axes already in NCHW order
    return out[:, :, :HW].reshape(N, Cout, H, W)


# ------------------------- deterministic parameter init ----------------------
def init_params(key, in_channels, out_channels, kernel_size=3, shift_radius=1, rank=4):
    n_shifts = (2 * shift_radius + 1) ** 2
    s2 = n_shifts * n_shifts
    k1, k2, k3, k4, k5, k6 = jax.random.split(key, 6)
    fan1 = float(in_channels * kernel_size * kernel_size)
    # kaiming_normal_(fan_in, linear): std = 1/sqrt(fan_in); biases: default conv init
    w1 = jax.random.normal(k1, (out_channels, in_channels, kernel_size, kernel_size),
                           jnp.float32) / jnp.sqrt(fan1)
    b1 = jax.random.uniform(k2, (out_channels,), jnp.float32,
                            -1.0 / jnp.sqrt(fan1), 1.0 / jnp.sqrt(fan1))
    w2a = jax.random.normal(k3, (s2, rank, out_channels, in_channels),
                            jnp.float32) / jnp.sqrt(float(in_channels))
    b2a = jax.random.uniform(k4, (s2, rank, out_channels), jnp.float32,
                             -1.0 / jnp.sqrt(float(in_channels)),
                             1.0 / jnp.sqrt(float(in_channels)))
    w2b = jax.random.normal(k5, (s2, rank, out_channels, out_channels),
                            jnp.float32) / jnp.sqrt(float(out_channels))
    b2b = jax.random.uniform(k6, (s2, rank, out_channels), jnp.float32,
                             -1.0 / jnp.sqrt(float(out_channels)),
                             1.0 / jnp.sqrt(float(out_channels)))
    return dict(w1=w1, b1=b1, w2a=w2a, b2a=b2a, w2b=w2b, b2b=b2b)


# ------------------------------ pure-JAX reference ----------------------------
def reference_forward(x, params, *, kernel_size=3, shift_radius=1, rank=4):
    w1, b1 = params["w1"], params["b1"]
    w2a, b2a, w2b, b2b = params["w2a"], params["b2a"], params["w2b"], params["b2b"]
    pad = kernel_size // 2
    hi = jax.lax.Precision.HIGHEST
    f1 = jax.lax.conv_general_dilated(
        x, w1, (1, 1), [(pad, pad), (pad, pad)],
        dimension_numbers=("NCHW", "OIHW", "NCHW"),
        precision=hi) + b1[None, :, None, None]
    offsets = [(dy, dx) for dy in range(-shift_radius, shift_radius + 1)
               for dx in range(-shift_radius, shift_radius + 1)]
    shifted = [jnp.roll(x, (dy, dx), axis=(2, 3)) for (dy, dx) in offsets]
    n = len(offsets)
    f2 = jnp.zeros_like(f1)
    for i in range(n):
        for j in range(n):
            s = i * n + j
            p = shifted[i] * shifted[j]
            for q in range(rank):
                h = jnp.einsum("oc,nchw->nohw", w2a[s, q], p,
                               precision=hi) + b2a[s, q][None, :, None, None]
                f2 = f2 + jnp.einsum("oc,nchw->nohw", w2b[s, q], h,
                                     precision=hi) + b2b[s, q][None, :, None, None]
    f2 = f2 / float(n * n)
    return f1 + f2


# ----------------------------------- main -------------------------------------
if __name__ == "__main__":
    key = jax.random.PRNGKey(0)
    kx, kp = jax.random.split(key)
    N, Cin, Cout, H, W = 2, 4, 8, 16, 16
    x = jax.random.normal(kx, (N, Cin, H, W), jnp.float32)
    params = init_params(kp, Cin, Cout, kernel_size=3, shift_radius=1, rank=4)

    ref = reference_forward(x, params, kernel_size=3, shift_radius=1, rank=4)

    # f32 MXU operands / f32 slab: tight tolerance vs the pure-JAX reference.
    out_f32 = jax.block_until_ready(
        volterra_layer_2d(x, params, compute_dtype=jnp.float32))
    assert out_f32.shape == (N, Cout, H, W)
    err_f32 = float(jnp.max(jnp.abs(out_f32 - ref)))
    assert err_f32 < 5e-3, f"f32 mismatch vs reference: {err_f32}"

    # bf16 MXU operands + bf16 feature slab, f32 accumulation (default fast path).
    out = jax.block_until_ready(volterra_layer_2d(x, params))
    assert out.shape == (N, Cout, H, W)

    # same debug semantics as the PyTorch module's NaN/Inf checks
    if bool(jnp.isnan(out).any()):
        print("❗ NaN detected in output!")
    if bool(jnp.isinf(out).any()):
        print("❗ Inf detected in output!")

    err_bf16 = float(jnp.max(jnp.abs(out - ref)))
    assert err_bf16 < 6e-2, f"bf16 mismatch vs reference: {err_bf16}"

    print("KERNEL_OK")
</pallas_src>

<mosaic_0001>
module attributes {stable_mosaic.version = 11 : i64} {
  func.func @_volterra_kernel(%arg0: i32, %arg1: i32, %arg2: memref<2x256xi32, #tpu.memory_space<vmem>>, %arg3: memref<1x36x256xf32, #tpu.memory_space<vmem>>, %arg4: memref<8x224xf32, #tpu.memory_space<vmem>>, %arg5: memref<1x8x256xf32, #tpu.memory_space<vmem>>, %arg6: memref<224x256xf32, #tpu.memory_space<vmem>>) attributes {dimension_semantics = [#tpu.dimension_semantics<parallel>, #tpu.dimension_semantics<parallel>], iteration_bounds = array<i64: 2, 1>, scalar_prefetch = 0 : i64, scratch_operands = 1 : i64, tpu.core_type = #tpu.core_type<tc>, window_params = [{transform_indices = @transform_0, window_bounds = array<i64: 2, 256>}, {transform_indices = @transform_1, window_bounds = array<i64: 1, 36, 256>}, {pipeline_mode = #tpu.pipeline_mode<synchronous>, transform_indices = @transform_2, window_bounds = array<i64: 8, 224>}, {transform_indices = @transform_3, window_bounds = array<i64: 1, 8, 256>}]} {
    %c0 = arith.constant 0 : index
    %c0_0 = arith.constant 0 : index
    %0 = vector.load %arg2[%c0, %c0_0] : memref<2x256xi32, #tpu.memory_space<vmem>>, vector<1x256xi32>
    %c1 = arith.constant 1 : index
    %c0_1 = arith.constant 0 : index
    %1 = vector.load %arg2[%c1, %c0_1] : memref<2x256xi32, #tpu.memory_space<vmem>>, vector<1x256xi32>
    %c-1_i32 = arith.constant -1 : i32
    %2 = vector.broadcast %c-1_i32 : i32 to vector<1x256xi32>
    %3 = arith.cmpi sge, %0, %2 : vector<1x256xi32>
    %c15_i32 = arith.constant 15 : i32
    %4 = vector.broadcast %c15_i32 : i32 to vector<1x256xi32>
    %5 = arith.cmpi slt, %0, %4 : vector<1x256xi32>
    %6 = arith.andi %3, %5 : vector<1x256xi1>
    %c-1_i32_2 = arith.constant -1 : i32
    %7 = vector.broadcast %c-1_i32_2 : i32 to vector<1x256xi32>
    %8 = arith.cmpi sge, %1, %7 : vector<1x256xi32>
    %9 = arith.andi %6, %8 : vector<1x256xi1>
    %c15_i32_3 = arith.constant 15 : i32
    %10 = vector.broadcast %c15_i32_3 : i32 to vector<1x256xi32>
    %11 = arith.cmpi slt, %1, %10 : vector<1x256xi32>
    %12 = arith.andi %9, %11 : vector<1x256xi1>
    %c0_4 = arith.constant 0 : index
    %c0_5 = arith.constant 0 : index
    %c0_6 = arith.constant 0 : index
    %13 = vector.load %arg3[%c0_4, %c0_5, %c0_6] : memref<1x36x256xf32, #tpu.memory_space<vmem>>, vector<1x4x256xf32>
    %14 = vector.shape_cast %13 : vector<1x4x256xf32> to vector<4x256xf32>
    %cst = arith.constant 0.000000e+00 : f32
    %15 = vector.shape_cast %12 : vector<1x256xi1> to vector<1x256xi1>
    %16 = vector.broadcast %15 : vector<1x256xi1> to vector<4x256xi1>
    %17 = vector.broadcast %cst : f32 to vector<4x256xf32>
    %18 = arith.select %16, %14, %17 : vector<4x256xi1>, vector<4x256xf32>
    %c0_7 = arith.constant 0 : index
    %c0_8 = arith.constant 0 : index
    %19 = vector.load %arg6[%c0_7, %c0_8] : memref<224x256xf32, #tpu.memory_space<vmem>>, vector<4x256xf32>
    tpu.vector_store %arg6[%c0_7, %c0_8], %18 {strides = array<i32>} : memref<224x256xf32, #tpu.memory_space<vmem>>, vector<4x256xf32>,
    %c-1_i32_9 = arith.constant -1 : i32
    %20 = vector.broadcast %c-1_i32_9 : i32 to vector<1x256xi32>
    %21 = arith.cmpi sge, %0, %20 : vector<1x256xi32>
    %c15_i32_10 = arith.constant 15 : i32
    %22 = vector.broadcast %c15_i32_10 : i32 to vector<1x256xi32>
    %23 = arith.cmpi slt, %0, %22 : vector<1x256xi32>
    %24 = arith.andi %21, %23 : vector<1x256xi1>
    %c0_i32 = arith.constant 0 : i32
    %25 = vector.broadcast %c0_i32 : i32 to vector<1x256xi32>
    %26 = arith.cmpi sge, %1, %25 : vector<1x256xi32>
    %27 = arith.andi %24, %26 : vector<1x256xi1>
    %c16_i32 = arith.constant 16 : i32
    %28 = vector.broadcast %c16_i32 : i32 to vector<1x256xi32>
    %29 = arith.cmpi slt, %1, %28 : vector<1x256xi32>
    %30 = arith.andi %27, %29 : vector<1x256xi1>
    %c0_11 = arith.constant 0 : index
    %c4 = arith.constant 4 : index
    %c0_12 = arith.constant 0 : index
    %31 = vector.load %arg3[%c0_11, %c4, %c0_12] : memref<1x36x256xf32, #tpu.memory_space<vmem>>, vector<1x4x256xf32>
    %32 = vector.shape_cast %31 : vector<1x4x256xf32> to vector<4x256xf32>
    %cst_13 = arith.constant 0.000000e+00 : f32
    %33 = vector.shape_cast %30 : vector<1x256xi1> to vector<1x256xi1>
    %34 = vector.broadcast %33 : vector<1x256xi1> to vector<4x256xi1>
    %35 = vector.broadcast %cst_13 : f32 to vector<4x256xf32>
    %36 = arith.select %34, %32, %35 : vector<4x256xi1>, vector<4x256xf32>
    %c4_14 = arith.constant 4 : index
    %c0_15 = arith.constant 0 : index
    %37 = vector.load %arg6[%c4_14, %c0_15] : memref<224x256xf32, #tpu.memory_space<vmem>>, vector<4x256xf32>
    tpu.vector_store %arg6[%c4_14, %c0_15], %36 {strides = array<i32>} : memref<224x256xf32, #tpu.memory_space<vmem>>, vector<4x256xf32>,
    %c-1_i32_16 = arith.constant -1 : i32
    %38 = vector.broadcast %c-1_i32_16 : i32 to vector<1x256xi32>
    %39 = arith.cmpi sge, %0, %38 : vector<1x256xi32>
    %c15_i32_17 = arith.constant 15 : i32
    %40 = vector.broadcast %c15_i32_17 : i32 to vector<1x256xi32>
    %41 = arith.cmpi slt, %0, %40 : vector<1x256xi32>
    %42 = arith.andi %39, %41 : vector<1x256xi1>
    %c1_i32 = arith.constant 1 : i32
    %43 = vector.broadcast %c1_i32 : i32 to vector<1x256xi32>
    %44 = arith.cmpi sge, %1, %43 : vector<1x256xi32>
    %45 = arith.andi %42, %44 : vector<1x256xi1>
    %c17_i32 = arith.constant 17 : i32
    %46 = vector.broadcast %c17_i32 : i32 to vector<1x256xi32>
    %47 = arith.cmpi slt, %1, %46 : vector<1x256xi32>
    %48 = arith.andi %45, %47 : vector<1x256xi1>
    %c0_18 = arith.constant 0 : index
    %c8 = arith.constant 8 : index
    %c0_19 = arith.constant 0 : index
    %49 = vector.load %arg3[%c0_18, %c8, %c0_19] : memref<1x36x256xf32, #tpu.memory_space<vmem>>, vector<1x4x256xf32>
    %50 = vector.shape_cast %49 : vector<1x4x256xf32> to vector<4x256xf32>
    %cst_20 = arith.constant 0.000000e+00 : f32
    %51 = vector.shape_cast %48 : vector<1x256xi1> to vector<1x256xi1>
    %52 = vector.broadcast %51 : vector<1x256xi1> to vector<4x256xi1>
    %53 = vector.broadcast %cst_20 : f32 to vector<4x256xf32>
    %54 = arith.select %52, %50, %53 : vector<4x256xi1>, vector<4x256xf32>
    %c8_21 = arith.constant 8 : index
    %c0_22 = arith.constant 0 : index
    %55 = vector.load %arg6[%c8_21, %c0_22] : memref<224x256xf32, #tpu.memory_space<vmem>>, vector<4x256xf32>
    tpu.vector_store %arg6[%c8_21, %c0_22], %54 {strides = array<i32>} : memref<224x256xf32, #tpu.memory_space<vmem>>, vector<4x256xf32>,
    %c0_i32_23 = arith.constant 0 : i32
    %56 = vector.broadcast %c0_i32_23 : i32 to vector<1x256xi32>
    %57 = arith.cmpi sge, %0, %56 : vector<1x256xi32>
    %c16_i32_24 = arith.constant 16 : i32
    %58 = vector.broadcast %c16_i32_24 : i32 to vector<1x256xi32>
    %59 = arith.cmpi slt, %0, %58 : vector<1x256xi32>
    %60 = arith.andi %57, %59 : vector<1x256xi1>
    %c-1_i32_25 = arith.constant -1 : i32
    %61 = vector.broadcast %c-1_i32_25 : i32 to vector<1x256xi32>
    %62 = arith.cmpi sge, %1, %61 : vector<1x256xi32>
    %63 = arith.andi %60, %62 : vector<1x256xi1>
    %c15_i32_26 = arith.constant 15 : i32
    %64 = vector.broadcast %c15_i32_26 : i32 to vector<1x256xi32>
    %65 = arith.cmpi slt, %1, %64 : vector<1x256xi32>
    %66 = arith.andi %63, %65 : vector<1x256xi1>
    %c0_27 = arith.constant 0 : index
    %c12 = arith.constant 12 : index
    %c0_28 = arith.constant 0 : index
    %67 = vector.load %arg3[%c0_27, %c12, %c0_28] : memref<1x36x256xf32, #tpu.memory_space<vmem>>, vector<1x4x256xf32>
    %68 = vector.shape_cast %67 : vector<1x4x256xf32> to vector<4x256xf32>
    %cst_29 = arith.constant 0.000000e+00 : f32
    %69 = vector.shape_cast %66 : vector<1x256xi1> to vector<1x256xi1>
    %70 = vector.broadcast %69 : vector<1x256xi1> to vector<4x256xi1>
    %71 = vector.broadcast %cst_29 : f32 to vector<4x256xf32>
    %72 = arith.select %70, %68, %71 : vector<4x256xi1>, vector<4x256xf32>
    %c12_30 = arith.constant 12 : index
    %c0_31 = arith.constant 0 : index
    %73 = vector.load %arg6[%c12_30, %c0_31] : memref<224x256xf32, #tpu.memory_space<vmem>>, vector<4x256xf32>
    tpu.vector_store %arg6[%c12_30, %c0_31], %72 {strides = array<i32>} : memref<224x256xf32, #tpu.memory_space<vmem>>, vector<4x256xf32>,
    %c0_i32_32 = arith.constant 0 : i32
    %74 = vector.broadcast %c0_i32_32 : i32 to vector<1x256xi32>
    %75 = arith.cmpi sge, %0, %74 : vector<1x256xi32>
    %c16_i32_33 = arith.constant 16 : i32
    %76 = vector.broadcast %c16_i32_33 : i32 to vector<1x256xi32>
    %77 = arith.cmpi slt, %0, %76 : vector<1x256xi32>
    %78 = arith.andi %75, %77 : vector<1x256xi1>
    %c0_i32_34 = arith.constant 0 : i32
    %79 = vector.broadcast %c0_i32_34 : i32 to vector<1x256xi32>
    %80 = arith.cmpi sge, %1, %79 : vector<1x256xi32>
    %81 = arith.andi %78, %80 : vector<1x256xi1>
    %c16_i32_35 = arith.constant 16 : i32
    %82 = vector.broadcast %c16_i32_35 : i32 to vector<1x256xi32>
    %83 = arith.cmpi slt, %1, %82 : vector<1x256xi32>
    %84 = arith.andi %81, %83 : vector<1x256xi1>
    %c0_36 = arith.constant 0 : index
    %c16 = arith.constant 16 : index
    %c0_37 = arith.constant 0 : index
    %85 = vector.load %arg3[%c0_36, %c16, %c0_37] : memref<1x36x256xf32, #tpu.memory_space<vmem>>, vector<1x4x256xf32>
    %86 = vector.shape_cast %85 : vector<1x4x256xf32> to vector<4x256xf32>
    %cst_38 = arith.constant 0.000000e+00 : f32
    %87 = vector.shape_cast %84 : vector<1x256xi1> to vector<1x256xi1>
    %88 = vector.broadcast %87 : vector<1x256xi1> to vector<4x256xi1>
    %89 = vector.broadcast %cst_38 : f32 to vector<4x256xf32>
    %90 = arith.select %88, %86, %89 : vector<4x256xi1>, vector<4x256xf32>
    %c16_39 = arith.constant 16 : index
    %c0_40 = arith.constant 0 : index
    %91 = vector.load %arg6[%c16_39, %c0_40] : memref<224x256xf32, #tpu.memory_space<vmem>>, vector<4x256xf32>
    tpu.vector_store %arg6[%c16_39, %c0_40], %90 {strides = array<i32>} : memref<224x256xf32, #tpu.memory_space<vmem>>, vector<4x256xf32>,
    %c0_i32_41 = arith.constant 0 : i32
    %92 = vector.broadcast %c0_i32_41 : i32 to vector<1x256xi32>
    %93 = arith.cmpi sge, %0, %92 : vector<1x256xi32>
    %c16_i32_42 = arith.constant 16 : i32
    %94 = vector.broadcast %c16_i32_42 : i32 to vector<1x256xi32>
    %95 = arith.cmpi slt, %0, %94 : vector<1x256xi32>
    %96 = arith.andi %93, %95 : vector<1x256xi1>
    %c1_i32_43 = arith.constant 1 : i32
    %97 = vector.broadcast %c1_i32_43 : i32 to vector<1x256xi32>
    %98 = arith.cmpi sge, %1, %97 : vector<1x256xi32>
    %99 = arith.andi %96, %98 : vector<1x256xi1>
    %c17_i32_44 = arith.constant 17 : i32
    %100 = vector.broadcast %c17_i32_44 : i32 to vector<1x256xi32>
    %101 = arith.cmpi slt, %1, %100 : vector<1x256xi32>
    %102 = arith.andi %99, %101 : vector<1x256xi1>
    %c0_45 = arith.constant 0 : index
    %c20 = arith.constant 20 : index
    %c0_46 = arith.constant 0 : index
    %103 = vector.load %arg3[%c0_45, %c20, %c0_46] : memref<1x36x256xf32, #tpu.memory_space<vmem>>, vector<1x4x256xf32>
    %104 = vector.shape_cast %103 : vector<1x4x256xf32> to vector<4x256xf32>
    %cst_47 = arith.constant 0.000000e+00 : f32
    %105 = vector.shape_cast %102 : vector<1x256xi1> to vector<1x256xi1>
    %106 = vector.broadcast %105 : vector<1x256xi1> to vector<4x256xi1>
    %107 = vector.broadcast %cst_47 : f32 to vector<4x256xf32>
    %108 = arith.select %106, %104, %107 : vector<4x256xi1>, vector<4x256xf32>
    %c20_48 = arith.constant 20 : index
    %c0_49 = arith.constant 0 : index
    %109 = vector.load %arg6[%c20_48, %c0_49] : memref<224x256xf32, #tpu.memory_space<vmem>>, vector<4x256xf32>
    tpu.vector_store %arg6[%c20_48, %c0_49], %108 {strides = array<i32>} : memref<224x256xf32, #tpu.memory_space<vmem>>, vector<4x256xf32>,
    %c1_i32_50 = arith.constant 1 : i32
    %110 = vector.broadcast %c1_i32_50 : i32 to vector<1x256xi32>
    %111 = arith.cmpi sge, %0, %110 : vector<1x256xi32>
    %c17_i32_51 = arith.constant 17 : i32
    %112 = vector.broadcast %c17_i32_51 : i32 to vector<1x256xi32>
    %113 = arith.cmpi slt, %0, %112 : vector<1x256xi32>
    %114 = arith.andi %111, %113 : vector<1x256xi1>
    %c-1_i32_52 = arith.constant -1 : i32
    %115 = vector.broadcast %c-1_i32_52 : i32 to vector<1x256xi32>
    %116 = arith.cmpi sge, %1, %115 : vector<1x256xi32>
    %117 = arith.andi %114, %116 : vector<1x256xi1>
    %c15_i32_53 = arith.constant 15 : i32
    %118 = vector.broadcast %c15_i32_53 : i32 to vector<1x256xi32>
    %119 = arith.cmpi slt, %1, %118 : vector<1x256xi32>
    %120 = arith.andi %117, %119 : vector<1x256xi1>
    %c0_54 = arith.constant 0 : index
    %c24 = arith.constant 24 : index
    %c0_55 = arith.constant 0 : index
    %121 = vector.load %arg3[%c0_54, %c24, %c0_55] : memref<1x36x256xf32, #tpu.memory_space<vmem>>, vector<1x4x256xf32>
    %122 = vector.shape_cast %121 : vector<1x4x256xf32> to vector<4x256xf32>
    %cst_56 = arith.constant 0.000000e+00 : f32
    %123 = vector.shape_cast %120 : vector<1x256xi1> to vector<1x256xi1>
    %124 = vector.broadcast %123 : vector<1x256xi1> to vector<4x256xi1>
    %125 = vector.broadcast %cst_56 : f32 to vector<4x256xf32>
    %126 = arith.select %124, %122, %125 : vector<4x256xi1>, vector<4x256xf32>
    %c24_57 = arith.constant 24 : index
    %c0_58 = arith.constant 0 : index
    %127 = vector.load %arg6[%c24_57, %c0_58] : memref<224x256xf32, #tpu.memory_space<vmem>>, vector<4x256xf32>
    tpu.vector_store %arg6[%c24_57, %c0_58], %126 {strides = array<i32>} : memref<224x256xf32, #tpu.memory_space<vmem>>, vector<4x256xf32>,
    %c1_i32_59 = arith.constant 1 : i32
    %128 = vector.broadcast %c1_i32_59 : i32 to vector<1x256xi32>
    %129 = arith.cmpi sge, %0, %128 : vector<1x256xi32>
    %c17_i32_60 = arith.constant 17 : i32
    %130 = vector.broadcast %c17_i32_60 : i32 to vector<1x256xi32>
    %131 = arith.cmpi slt, %0, %130 : vector<1x256xi32>
    %132 = arith.andi %129, %131 : vector<1x256xi1>
    %c0_i32_61 = arith.constant 0 : i32
    %133 = vector.broadcast %c0_i32_61 : i32 to vector<1x256xi32>
    %134 = arith.cmpi sge, %1, %133 : vector<1x256xi32>
    %135 = arith.andi %132, %134 : vector<1x256xi1>
    %c16_i32_62 = arith.constant 16 : i32
    %136 = vector.broadcast %c16_i32_62 : i32 to vector<1x256xi32>
    %137 = arith.cmpi slt, %1, %136 : vector<1x256xi32>
    %138 = arith.andi %135, %137 : vector<1x256xi1>
    %c0_63 = arith.constant 0 : index
    %c28 = arith.constant 28 : index
    %c0_64 = arith.constant 0 : index
    %139 = vector.load %arg3[%c0_63, %c28, %c0_64] : memref<1x36x256xf32, #tpu.memory_space<vmem>>, vector<1x4x256xf32>
    %140 = vector.shape_cast %139 : vector<1x4x256xf32> to vector<4x256xf32>
    %cst_65 = arith.constant 0.000000e+00 : f32
    %141 = vector.shape_cast %138 : vector<1x256xi1> to vector<1x256xi1>
    %142 = vector.broadcast %141 : vector<1x256xi1> to vector<4x256xi1>
    %143 = vector.broadcast %cst_65 : f32 to vector<4x256xf32>
    %144 = arith.select %142, %140, %143 : vector<4x256xi1>, vector<4x256xf32>
    %c28_66 = arith.constant 28 : index
    %c0_67 = arith.constant 0 : index
    %145 = vector.load %arg6[%c28_66, %c0_67] : memref<224x256xf32, #tpu.memory_space<vmem>>, vector<4x256xf32>
    tpu.vector_store %arg6[%c28_66, %c0_67], %144 {strides = array<i32>} : memref<224x256xf32, #tpu.memory_space<vmem>>, vector<4x256xf32>,
    %c1_i32_68 = arith.constant 1 : i32
    %146 = vector.broadcast %c1_i32_68 : i32 to vector<1x256xi32>
    %147 = arith.cmpi sge, %0, %146 : vector<1x256xi32>
    %c17_i32_69 = arith.constant 17 : i32
    %148 = vector.broadcast %c17_i32_69 : i32 to vector<1x256xi32>
    %149 = arith.cmpi slt, %0, %148 : vector<1x256xi32>
    %150 = arith.andi %147, %149 : vector<1x256xi1>
    %c1_i32_70 = arith.constant 1 : i32
    %151 = vector.broadcast %c1_i32_70 : i32 to vector<1x256xi32>
    %152 = arith.cmpi sge, %1, %151 : vector<1x256xi32>
    %153 = arith.andi %150, %152 : vector<1x256xi1>
    %c17_i32_71 = arith.constant 17 : i32
    %154 = vector.broadcast %c17_i32_71 : i32 to vector<1x256xi32>
    %155 = arith.cmpi slt, %1, %154 : vector<1x256xi32>
    %156 = arith.andi %153, %155 : vector<1x256xi1>
    %c0_72 = arith.constant 0 : index
    %c32 = arith.constant 32 : index
    %c0_73 = arith.constant 0 : index
    %157 = vector.load %arg3[%c0_72, %c32, %c0_73] : memref<1x36x256xf32, #tpu.memory_space<vmem>>, vector<1x4x256xf32>
    %158 = vector.shape_cast %157 : vector<1x4x256xf32> to vector<4x256xf32>
    %cst_74 = arith.constant 0.000000e+00 : f32
    %159 = vector.shape_cast %156 : vector<1x256xi1> to vector<1x256xi1>
    %160 = vector.broadcast %159 : vector<1x256xi1> to vector<4x256xi1>
    %161 = vector.broadcast %cst_74 : f32 to vector<4x256xf32>
    %162 = arith.select %160, %158, %161 : vector<4x256xi1>, vector<4x256xf32>
    %c32_75 = arith.constant 32 : index
    %c0_76 = arith.constant 0 : index
    %163 = vector.load %arg6[%c32_75, %c0_76] : memref<224x256xf32, #tpu.memory_space<vmem>>, vector<4x256xf32>
    tpu.vector_store %arg6[%c32_75, %c0_76], %162 {strides = array<i32>} : memref<224x256xf32, #tpu.memory_space<vmem>>, vector<4x256xf32>,
    %c0_77 = arith.constant 0 : index
    %c0_78 = arith.constant 0 : index
    %c0_79 = arith.constant 0 : index
    %164 = vector.load %arg3[%c0_77, %c0_78, %c0_79] : memref<1x36x256xf32, #tpu.memory_space<vmem>>, vector<1x36x256xf32>
    %165 = vector.shape_cast %164 : vector<1x36x256xf32> to vector<36x256xf32>
    %c0_80 = arith.constant 0 : index
    %c0_81 = arith.constant 0 : index
    %c0_82 = arith.constant 0 : index
    %166 = vector.load %arg3[%c0_80, %c0_81, %c0_82] : memref<1x36x256xf32, #tpu.memory_space<vmem>>, vector<1x36x256xf32>
    %167 = vector.shape_cast %166 : vector<1x36x256xf32> to vector<36x256xf32>
    %168 = arith.mulf %165, %167 : vector<36x256xf32>
    %c36 = arith.constant 36 : index
    %c0_83 = arith.constant 0 : index
    %169 = vector.load %arg6[%c36, %c0_83] : memref<224x256xf32, #tpu.memory_space<vmem>>, vector<36x256xf32>
    tpu.vector_store %arg6[%c36, %c0_83], %168 {strides = array<i32>} : memref<224x256xf32, #tpu.memory_space<vmem>>, vector<36x256xf32>,
    %c0_84 = arith.constant 0 : index
    %c0_85 = arith.constant 0 : index
    %c0_86 = arith.constant 0 : index
    %170 = vector.load %arg3[%c0_84, %c0_85, %c0_86] : memref<1x36x256xf32, #tpu.memory_space<vmem>>, vector<1x32x256xf32>
    %171 = vector.shape_cast %170 : vector<1x32x256xf32> to vector<32x256xf32>
    %c0_87 = arith.constant 0 : index
    %c4_88 = arith.constant 4 : index
    %c0_89 = arith.constant 0 : index
    %172 = vector.load %arg3[%c0_87, %c4_88, %c0_89] : memref<1x36x256xf32, #tpu.memory_space<vmem>>, vector<1x32x256xf32>
    %173 = vector.shape_cast %172 : vector<1x32x256xf32> to vector<32x256xf32>
    %174 = arith.mulf %171, %173 : vector<32x256xf32>
    %c72 = arith.constant 72 : index
    %c0_90 = arith.constant 0 : index
    %175 = vector.load %arg6[%c72, %c0_90] : memref<224x256xf32, #tpu.memory_space<vmem>>, vector<32x256xf32>
    tpu.vector_store %arg6[%c72, %c0_90], %174 {strides = array<i32>} : memref<224x256xf32, #tpu.memory_space<vmem>>, vector<32x256xf32>,
    %c0_91 = arith.constant 0 : index
    %c0_92 = arith.constant 0 : index
    %c0_93 = arith.constant 0 : index
    %176 = vector.load %arg3[%c0_91, %c0_92, %c0_93] : memref<1x36x256xf32, #tpu.memory_space<vmem>>, vector<1x28x256xf32>
    %177 = vector.shape_cast %176 : vector<1x28x256xf32> to vector<28x256xf32>
    %c0_94 = arith.constant 0 : index
    %c8_95 = arith.constant 8 : index
    %c0_96 = arith.constant 0 : index
    %178 = vector.load %arg3[%c0_94, %c8_95, %c0_96] : memref<1x36x256xf32, #tpu.memory_space<vmem>>, vector<1x28x256xf32>
    %179 = vector.shape_cast %178 : vector<1x28x256xf32> to vector<28x256xf32>
    %180 = arith.mulf %177, %179 : vector<28x256xf32>
    %c104 = arith.constant 104 : index
    %c0_97 = arith.constant 0 : index
    %181 = vector.load %arg6[%c104, %c0_97] : memref<224x256xf32, #tpu.memory_space<vmem>>, vector<28x256xf32>
    tpu.vector_store %arg6[%c104, %c0_97], %180 {strides = array<i32>} : memref<224x256xf32, #tpu.memory_space<vmem>>, vector<28x256xf32>,
    %c0_98 = arith.constant 0 : index
    %c0_99 = arith.constant 0 : index
    %c0_100 = arith.constant 0 : index
    %182 = vector.load %arg3[%c0_98, %c0_99, %c0_100] : memref<1x36x256xf32, #tpu.memory_space<vmem>>, vector<1x24x256xf32>
    %183 = vector.shape_cast %182 : vector<1x24x256xf32> to vector<24x256xf32>
    %c0_101 = arith.constant 0 : index
    %c12_102 = arith.constant 12 : index
    %c0_103 = arith.constant 0 : index
    %184 = vector.load %arg3[%c0_101, %c12_102, %c0_103] : memref<1x36x256xf32, #tpu.memory_space<vmem>>, vector<1x24x256xf32>
    %185 = vector.shape_cast %184 : vector<1x24x256xf32> to vector<24x256xf32>
    %186 = arith.mulf %183, %185 : vector<24x256xf32>
    %c132 = arith.constant 132 : index
    %c0_104 = arith.constant 0 : index
    %187 = vector.load %arg6[%c132, %c0_104] : memref<224x256xf32, #tpu.memory_space<vmem>>, vector<24x256xf32>
    tpu.vector_store %arg6[%c132, %c0_104], %186 {strides = array<i32>} : memref<224x256xf32, #tpu.memory_space<vmem>>, vector<24x256xf32>,
    %c0_105 = arith.constant 0 : index
    %c0_106 = arith.constant 0 : index
    %c0_107 = arith.constant 0 : index
    %188 = vector.load %arg3[%c0_105, %c0_106, %c0_107] : memref<1x36x256xf32, #tpu.memory_space<vmem>>, vector<1x20x256xf32>
    %189 = vector.shape_cast %188 : vector<1x20x256xf32> to vector<20x256xf32>
    %c0_108 = arith.constant 0 : index
    %c16_109 = arith.constant 16 : index
    %c0_110 = arith.constant 0 : index
    %190 = vector.load %arg3[%c0_108, %c16_109, %c0_110] : memref<1x36x256xf32, #tpu.memory_space<vmem>>, vector<1x20x256xf32>
    %191 = vector.shape_cast %190 : vector<1x20x256xf32> to vector<20x256xf32>
    %192 = arith.mulf %189, %191 : vector<20x256xf32>
    %c156 = arith.constant 156 : index
    %c0_111 = arith.constant 0 : index
    %193 = vector.load %arg6[%c156, %c0_111] : memref<224x256xf32, #tpu.memory_space<vmem>>, vector<20x256xf32>
    tpu.vector_store %arg6[%c156, %c0_111], %192 {strides = array<i32>} : memref<224x256xf32, #tpu.memory_space<vmem>>, vector<20x256xf32>,
    %c0_112 = arith.constant 0 : index
    %c0_113 = arith.constant 0 : index
    %c0_114 = arith.constant 0 : index
    %194 = vector.load %arg3[%c0_112, %c0_113, %c0_114] : memref<1x36x256xf32, #tpu.memory_space<vmem>>, vector<1x16x256xf32>
    %195 = vector.shape_cast %194 : vector<1x16x256xf32> to vector<16x256xf32>
    %c0_115 = arith.constant 0 : index
    %c20_116 = arith.constant 20 : index
    %c0_117 = arith.constant 0 : index
    %196 = vector.load %arg3[%c0_115, %c20_116, %c0_117] : memref<1x36x256xf32, #tpu.memory_space<vmem>>, vector<1x16x256xf32>
    %197 = vector.shape_cast %196 : vector<1x16x256xf32> to vector<16x256xf32>
    %198 = arith.mulf %195, %197 : vector<16x256xf32>
    %c176 = arith.constant 176 : index
    %c0_118 = arith.constant 0 : index
    %199 = vector.load %arg6[%c176, %c0_118] : memref<224x256xf32, #tpu.memory_space<vmem>>, vector<16x256xf32>
    tpu.vector_store %arg6[%c176, %c0_118], %198 {strides = array<i32>} : memref<224x256xf32, #tpu.memory_space<vmem>>, vector<16x256xf32>,
    %c0_119 = arith.constant 0 : index
    %c0_120 = arith.constant 0 : index
    %c0_121 = arith.constant 0 : index
    %200 = vector.load %arg3[%c0_119, %c0_120, %c0_121] : memref<1x36x256xf32, #tpu.memory_space<vmem>>, vector<1x12x256xf32>
    %201 = vector.shape_cast %200 : vector<1x12x256xf32> to vector<12x256xf32>
    %c0_122 = arith.constant 0 : index
    %c24_123 = arith.constant 24 : index
    %c0_124 = arith.constant 0 : index
    %202 = vector.load %arg3[%c0_122, %c24_123, %c0_124] : memref<1x36x256xf32, #tpu.memory_space<vmem>>, vector<1x12x256xf32>
    %203 = vector.shape_cast %202 : vector<1x12x256xf32> to vector<12x256xf32>
    %204 = arith.mulf %201, %203 : vector<12x256xf32>
    %c192 = arith.constant 192 : index
    %c0_125 = arith.constant 0 : index
    %205 = vector.load %arg6[%c192, %c0_125] : memref<224x256xf32, #tpu.memory_space<vmem>>, vector<12x256xf32>
    tpu.vector_store %arg6[%c192, %c0_125], %204 {strides = array<i32>} : memref<224x256xf32, #tpu.memory_space<vmem>>, vector<12x256xf32>,
    %c0_126 = arith.constant 0 : index
    %c0_127 = arith.constant 0 : index
    %c0_128 = arith.constant 0 : index
    %206 = vector.load %arg3[%c0_126, %c0_127, %c0_128] : memref<1x36x256xf32, #tpu.memory_space<vmem>>, vector<1x8x256xf32>
    %207 = vector.shape_cast %206 : vector<1x8x256xf32> to vector<8x256xf32>
    %c0_129 = arith.constant 0 : index
    %c28_130 = arith.constant 28 : index
    %c0_131 = arith.constant 0 : index
    %208 = vector.load %arg3[%c0_129, %c28_130, %c0_131] : memref<1x36x256xf32, #tpu.memory_space<vmem>>, vector<1x8x256xf32>
    %209 = vector.shape_cast %208 : vector<1x8x256xf32> to vector<8x256xf32>
    %210 = arith.mulf %207, %209 : vector<8x256xf32>
    %c204 = arith.constant 204 : index
    %c0_132 = arith.constant 0 : index
    %211 = vector.load %arg6[%c204, %c0_132] : memref<224x256xf32, #tpu.memory_space<vmem>>, vector<8x256xf32>
    tpu.vector_store %arg6[%c204, %c0_132], %210 {strides = array<i32>} : memref<224x256xf32, #tpu.memory_space<vmem>>, vector<8x256xf32>,
    %c0_133 = arith.constant 0 : index
    %c0_134 = arith.constant 0 : index
    %c0_135 = arith.constant 0 : index
    %212 = vector.load %arg3[%c0_133, %c0_134, %c0_135] : memref<1x36x256xf32, #tpu.memory_space<vmem>>, vector<1x4x256xf32>
    %213 = vector.shape_cast %212 : vector<1x4x256xf32> to vector<4x256xf32>
    %c0_136 = arith.constant 0 : index
    %c32_137 = arith.constant 32 : index
    %c0_138 = arith.constant 0 : index
    %214 = vector.load %arg3[%c0_136, %c32_137, %c0_138] : memref<1x36x256xf32, #tpu.memory_space<vmem>>, vector<1x4x256xf32>
    %215 = vector.shape_cast %214 : vector<1x4x256xf32> to vector<4x256xf32>
    %216 = arith.mulf %213, %215 : vector<4x256xf32>
    %c212 = arith.constant 212 : index
    %c0_139 = arith.constant 0 : index
    %217 = vector.load %arg6[%c212, %c0_139] : memref<224x256xf32, #tpu.memory_space<vmem>>, vector<4x256xf32>
    tpu.vector_store %arg6[%c212, %c0_139], %216 {strides = array<i32>} : memref<224x256xf32, #tpu.memory_space<vmem>>, vector<4x256xf32>,
    %cst_140 = arith.constant 1.000000e+00 : f32
    %218 = vector.broadcast %cst_140 : f32 to vector<8x256xf32>
    %c216 = arith.constant 216 : index
    %c0_141 = arith.constant 0 : index
    %219 = vector.load %arg6[%c216, %c0_141] : memref<224x256xf32, #tpu.memory_space<vmem>>, vector<8x256xf32>
    tpu.vector_store %arg6[%c216, %c0_141], %218 {strides = array<i32>} : memref<224x256xf32, #tpu.memory_space<vmem>>, vector<8x256xf32>,
    %c0_142 = arith.constant 0 : index
    %c0_143 = arith.constant 0 : index
    %220 = vector.load %arg4[%c0_142, %c0_143] : memref<8x224xf32, #tpu.memory_space<vmem>>, vector<8x224xf32>
    %c0_144 = arith.constant 0 : index
    %c0_145 = arith.constant 0 : index
    %221 = vector.load %arg6[%c0_144, %c0_145] : memref<224x256xf32, #tpu.memory_space<vmem>>, vector<224x256xf32>
    %cst_146 = arith.constant dense<0.000000e+00> : vector<8x256xf32>
    %222 = tpu.matmul %220, %221, %cst_146 {dimension_numbers = #tpu.dot_dimension_numbers<[1], [0], [0], [1], [0, 0, 1, 1], [], []>} : vector<8x224xf32>, vector<224x256xf32>, vector<8x256xf32> -> vector<8x256xf32>
    %c0_147 = arith.constant 0 : index
    %c0_148 = arith.constant 0 : index
    %c0_149 = arith.constant 0 : index
    %223 = vector.load %arg5[%c0_147, %c0_148, %c0_149] : memref<1x8x256xf32, #tpu.memory_space<vmem>>, vector<1x8x256xf32>
    %224 = vector.shape_cast %223 : vector<1x8x256xf32> to vector<8x256xf32>
    %225 = vector.shape_cast %222 : vector<8x256xf32> to vector<1x8x256xf32>
    tpu.vector_store %arg5[%c0_147, %c0_148, %c0_149], %225 {strides = array<i32>} : memref<1x8x256xf32, #tpu.memory_space<vmem>>, vector<1x8x256xf32>,
    return
  }
  func.func @transform_0(%arg0: i32, %arg1: i32) -> (i32, i32) {
    %c0_i32 = arith.constant 0 : i32
    %c0_i32_0 = arith.constant 0 : i32
    return %c0_i32, %arg1 : i32, i32
  }
  func.func @transform_1(%arg0: i32, %arg1: i32) -> (i32, i32, i32) {
    %c0_i32 = arith.constant 0 : i32
    %c0_i32_0 = arith.constant 0 : i32
    return %arg0, %c0_i32, %arg1 : i32, i32, i32
  }
  func.func @transform_2(%arg0: i32, %arg1: i32) -> (i32, i32) {
    %c0_i32 = arith.constant 0 : i32
    %c0_i32_0 = arith.constant 0 : i32
    %c0_i32_1 = arith.constant 0 : i32
    return %c0_i32, %c0_i32_0 : i32, i32
  }
  func.func @transform_3(%arg0: i32, %arg1: i32) -> (i32, i32, i32) {
    %c0_i32 = arith.constant 0 : i32
    %c0_i32_0 = arith.constant 0 : i32
    return %arg0, %c0_i32, %arg1 : i32, i32, i32
  }
}

</mosaic_0001>

<bundles_post_ra>
// kernel: volterra_layer_2d.1
= control target key start
LH: loop header
LB: loop body
LE: loop exit
PB: predicated region body
PF: predicated region fallthrough
CT: control target
= control target key end

     0   :  { %s1130_s12 = smov 0   ;;  %s1132_s13 = smov 0   ;;  %s1650_s0 = inlined_call_operand.vmem [shape: s32[2,256], index: 0, kind: input, shape index: {}]   ;;  %s1651_s1 = inlined_call_operand.vmem [shape: f32[2,36,256], index: 1, kind: input, shape index: {}]   ;;  %s1652_s2 = inlined_call_operand.vmem [shape: f32[8,224], index: 2, kind: input, shape index: {}]   ;;  %s1653_s3 = inlined_call_operand.vmem [shape: f32[2,8,256], index: 3, kind: output, shape index: {}]  }
   0x1   :  { %s1134_s14 = smov 0  }
   0x2 LB: > { %s25_s15 = sadd.s32 1, %s1102_s13  ;;  %p1048_p0 = scmp.ge.s32.totalorder %s1106_s14, 1  ;;  %s1106_s14 = sphi %s1134_s14, %s13_s14   ;;  %s1102_s13 = sphi %s1132_s13, %s1695_s13   ;;  %s1098_s12 = sphi %s1130_s12, %s1694_s12  }
   0x3   : > { %p27_p1 = scmp.ge.s32.totalorder %s25_s15, 2  ;;  %p169_p2 = scmp.lt.s32.totalorder %s1106_s14, 3 }
   0x5   : > { %s1697_s15 = smov (%p27_p1, %s25_s15), 0  ;;  %p170_p3 = pnand %p1048_p0, %p169_p2 }
   0x6   : > { %p213_p4 = scmp.lt.s32.totalorder (!%p170_p3), %s1098_s12, 1 }
   0x7   : > { %173 = sbr.rel (%p170_p3) target bundleno = 288 (0x120), region = 32 }
   0xc   : > { %v1151_v0 = vld [vmem:[%s1650_s0] ss:$2 sm:$0x3]  ;;  %v245_v1 = vlaneseq  ;;  %v1156_v2 = vld [vmem:[%s1650_s0 + $0x1] ss:$2 sm:$0x3] }
   0xd   : > { %vm361_vm0 = vcmp.ge.s32.totalorder %v1151_v0, 1  ;;  %vm362_vm1 = vcmp.lt.s32.totalorder %v1151_v0, 17  ;;  %s1699_s12 = smov (!%p213_p4, %s1098_s12), 1  ;;  %vm280_vm2 = vcmp.ge.s32.totalorder %v1156_v2, 1  ;;  %vm282_vm3 = vcmp.lt.s32.totalorder %v1156_v2, 17  ;;  %v807_v5 = vld [vmem:[%s1652_s2 + $0x8] sm:$0xff] }
   0xe   : > { %v246_v3 = vshrl.u32 %v245_v1, 7  ;;  %vm1164_vm4 = vmand %vm361_vm0, %vm362_vm1  ;;  %vm238_vm5 = vcmp.ge.s32.totalorder %v1156_v2, 4294967295  ;;  %vm240_vm7 = vcmp.lt.s32.totalorder %v1156_v2, 15  ;;  %s1057_s22 = smul.u32 80, %s1699_s12  ;;  %vm451_vm9 = vcmask 1043456   ;;  %s1056_s28 = sshll.u32 %s1699_s12, 4 }
   0xf   : > { %vm402_vm6 = vmand %vm1164_vm4, %vm280_vm2  ;;  %v1108_v8 = vmov 0   ;;  %vm864_vm11 = vcmask 785408   ;;  %vm259_vm12 = vcmp.ge.s32.totalorder %v1156_v2, 0  ;;  %vm261_vm13 = vcmp.lt.s32.totalorder %v1156_v2, 16  ;;  %s230_s4 = scalar_lea.vmem %s1653_s3, %s1056_s28 }
  0x10   : > { %v1178_v6 = vsub.s32 1, %v246_v3  ;;  %vm403_vm8 = vmand %vm402_vm6, %vm282_vm3  ;;  %v1182_v7 = vsub.s32 0, %v246_v3  ;;  %s1194_s25 = scalar_lea.vmem %s1651_s1, %s1057_s22  ;;  %vm301_vm15 = vcmp.ge.s32.totalorder %v1151_v0, 0  ;;  %vm302_vm0 = vcmp.lt.s32.totalorder %v1151_v0, 16  ;;  %1053 = vmatprep.mubr.msk.f32.mxu0 %vm864_vm11, %v807_v5 }
  0x11   : > { %v1185_v9 = vsel %vm403_vm8, 1, %v1108_v8  ;;  %vm364_vm10 = vmand %vm1164_vm4, %vm238_vm5  ;;  %v1203_v10 = vld [vmem:[%s1194_s25 + $0x28] sm:$0xff]  ;;  %v1206_v11 = vld [vmem:[%s1194_s25 + $0x38] sm:$0xff]  ;;  %vm235_vm1 = vcmp.ge.s32.totalorder %v1151_v0, 4294967295  ;;  %vm236_vm6 = vcmp.lt.s32.totalorder %v1151_v0, 15 }
  0x12   : > { %vm365_vm14 = vmand %vm364_vm10, %vm240_vm7  ;;  %v1209_v12 = vld [vmem:[%s1194_s25 + $0x20] sm:$0xff]  ;;  %v414_v13 = vrot.slane %v1185_v9, %v1178_v6  ;;  %v410_v14 = vrot.slane %v1185_v9, %v1182_v7  ;;  %v571_v16 = vmul.f32 %v1206_v11, %v1203_v10  ;;  %v1223_v17 = vld [vmem:[%s1194_s25 + $0x30] sm:$0xff]  ;;  %v1232_v20 = vrot.slane %v1206_v11, 4 }
  0x13   : > { %v1216_v15 = vsel %vm365_vm14, 1, %v1108_v8  ;;  %v1226_v18 = vld [vmem:[%s1194_s25 + $0x18] sm:$0xff]  ;;  %v1229_v19 = vld [vmem:[%s1194_s25 + $0x10] sm:$0xff]  ;;  %v1235_v21 = vrot.slane %v1203_v10, 4  ;;  %v1238_v22 = vrot.slane %v1209_v12, 4  ;;  %v570_v23 = vmul.f32 %v1223_v17, %v1209_v12  ;;  %v1247_v26 = vld [vmem:[%s1194_s25 + $0x8] sm:$0xff] }
  0x14   : > { %v569_v24 = vmul.f32 %v1203_v10, %v1226_v18  ;;  %v568_v25 = vmul.f32 %v1209_v12, %v1229_v19  ;;  %v1250_v27 = vld [vmem:[%s1194_s25] sm:$0xff]  ;;  %v501_v28 = vld [vmem:[%s1194_s25 + $0x48] sm:$0xf]  ;;  %v1254_v29 = vrot.slane %v1223_v17, 4  ;;  %868 = vmatprep.subr.mxu0 %v571_v16  ;;  %v567_v30 = vmul.f32 %v1226_v18, %v1247_v26  ;;  %v499_v35 = vld [vmem:[%s1194_s25 + $0x8] sm:$0xf0] }
  0x15   : > { %v566_v31 = vmul.f32 %v1229_v19, %v1250_v27  ;;  %v528_v32 = vrot.slane %v501_v28, 4  ;;  %v500_v33 = vld [vmem:[%s1194_s25 + $0x40] sm:$0xf]  ;;  %v1264_v34 = vsel %vm451_vm9, %v1235_v21, %v1232_v20  ;;  %869 = vmatpush1.msra.mxu0 %v570_v23  ;;  %v516_v39 = vrot.slane %v1226_v18, 4  ;;  %v498_v40 = vld [vmem:[%s1194_s25] sm:$0xf0]  ;;  %vm1292_vm8 = vmand %vm301_vm15, %vm302_vm0 }
  0x16   : > { %v526_v36 = vrot.slane %v500_v33, 4  ;;  %v543_v37 = vmul.f32 %v1203_v10, %v1264_v34  ;;  %v1272_v38 = vsel %vm451_vm9, %v1238_v22, %v1254_v29  ;;  %870 = vmatprep.subr.mxu0 %v569_v24  ;;  %v513_v43 = vrot.slane %v1229_v19, 4  ;;  %v430_v49 = vld [vmem:[%s1194_s25 + $0x48] sm:$0xf]  ;;  %v429_v50 = vld [vmem:[%s1194_s25 + $0x40] sm:$0xf]  ;;  %vm1305_vm10 = vmand %vm1164_vm4, %vm259_vm12 }
  0x17   : > { %v529_v41 = vsel %vm451_vm9, %v1232_v20, %v528_v32  ;;  %v542_v42 = vmul.f32 %v1209_v12, %v1272_v38  ;;  %v515_v44 = vrot.slane %v499_v35, 4  ;;  %871 = vmatpush1.msra.mxu0 %v568_v25  ;;  %v521_v47 = vsel %vm451_vm9, %v516_v39, %v1235_v21  ;;  %vm1321_vm4 = vmand %vm1292_vm8, %vm259_vm12  ;;  %v385_v3 = vld [vmem:[%s1194_s25 + $0x30] sm:$0xf0] }
  0x18   : > { %v545_v45 = vmul.f32 %v1206_v11, %v529_v41  ;;  %v527_v46 = vsel %vm451_vm9, %v1254_v29, %v526_v36  ;;  %v512_v48 = vrot.slane %v498_v40, 4  ;;  %872 = vmatprep.subr.mxu0 %v567_v30  ;;  %v541_v53 = vmul.f32 %v1226_v18, %v521_v47  ;;  %vm1335_vm11 = vmand %vm1305_vm10, %vm261_vm13 }
  0x19   : > { %v544_v52 = vmul.f32 %v1223_v17, %v527_v46  ;;  %v519_v54 = vsel %vm451_vm9, %v513_v43, %v1238_v22  ;;  %v517_v55 = vsel %vm451_vm9, %v515_v44, %v516_v39  ;;  %873 = vmatpush1.msra.mxu0 %v566_v31  ;;  %v438_v60 = vmul.f32 %v1206_v11, %v1206_v11  ;;  %vm1345_vm14 = vmand %vm235_vm1, %vm236_vm6  ;;  %v404_v44 = vld [vmem:[%s1194_s25 + $0x40] sm:$0xf] }
  0x1a   : > { %v540_v57 = vmul.f32 %v1229_v19, %v519_v54  ;;  %v539_v58 = vmul.f32 %v1247_v26, %v517_v55  ;;  %v514_v59 = vsel %vm451_vm9, %v512_v48, %v513_v43  ;;  %874 = vmatprep.subr.mxu0 %v545_v45  ;;  %v440_v62 = vmul.f32 %v430_v49, %v430_v49  ;;  %vm1355_vm15 = vmand %vm1321_vm4, %vm261_vm13  ;;  %v405_v43 = vld [vmem:[%s1194_s25 + $0x48] sm:$0xf]  ;;  %v306_v54 = vld [vmem:[%s1194_s25 + $0x10] sm:$0xf0] }
  0x1b   : > { %v538_v61 = vmul.f32 %v1250_v27, %v514_v59  ;;  %v437_v63 = vmul.f32 %v1223_v17, %v1223_v17  ;;  %v439_v1 = vmul.f32 %v429_v50, %v429_v50  ;;  %875 = vmatpush1.msra.mxu0 %v544_v52  ;;  %v464_v4 = vrot.slane %v438_v60, 4  ;;  %vm1369_vm0 = vmand %vm1292_vm8, %vm280_vm2  ;;  %v366_v60 = vld [vmem:[%s1194_s25 + $0x30] sm:$0xf] }
  0x1c   : > { %v436_v5 = vmul.f32 %v1203_v10, %v1203_v10  ;;  %v435_v16 = vmul.f32 %v1209_v12, %v1209_v12  ;;  %v434_v23 = vmul.f32 %v1226_v18, %v1226_v18  ;;  %876 = vmatprep.subr.mxu0 %v543_v37  ;;  %v468_v25 = vrot.slane %v440_v62, 4  ;;  %vm1380_vm1 = vmand %vm1345_vm14, %vm280_vm2 }
  0x1d   : > { %v462_v28 = vrot.slane %v437_v63, 4  ;;  %v466_v30 = vrot.slane %v439_v1, 4  ;;  %v433_v31 = vmul.f32 %v1229_v19, %v1229_v19  ;;  %877 = vmatpush1.msra.mxu0 %v542_v42  ;;  %v432_v37 = vmul.f32 %v1247_v26, %v1247_v26  ;;  %vm1395_vm2 = vmand %vm1292_vm8, %vm238_vm5 }
  0x1e   : > { %v460_v33 = vrot.slane %v436_v5, 4  ;;  %v458_v35 = vrot.slane %v435_v16, 4  ;;  %v456_v36 = vrot.slane %v434_v23, 4  ;;  %878 = vmatprep.subr.mxu0 %v541_v53  ;;  %v469_v0 = vsel %vm451_vm9, %v464_v4, %v468_v25  ;;  %vm1407_vm8 = vmand %vm1369_vm0, %vm282_vm3  ;;  %v326_v5 = vld [vmem:[%s1194_s25 + $0x28] sm:$0xf] }
  0x1f   : > { %v467_v40 = vsel %vm451_vm9, %v462_v28, %v466_v30  ;;  %v454_v41 = vrot.slane %v433_v31, 4  ;;  %v431_v42 = vmul.f32 %v1250_v27, %v1250_v27  ;;  %879 = vmatpush1.msra.mxu0 %v540_v57  ;;  %v453_v49 = vrot.slane %v432_v37, 4  ;;  %v367_v57 = vld [vmem:[%s1194_s25 + $0x38] sm:$0xf]  ;;  %vm1426_vm4 = vmand %vm1380_vm1, %vm282_vm3  ;;  %v345_v25 = vld [vmem:[%s1194_s25 + $0x28] sm:$0xf0] }
  0x20   : > { %v465_v46 = vsel %vm451_vm9, %v460_v33, %v464_v4  ;;  %v463_v47 = vsel %vm451_vm9, %v458_v35, %v462_v28  ;;  %v461_v48 = vsel %vm451_vm9, %v456_v36, %v460_v33  ;;  %880 = vmatprep.subr.mxu0 %v539_v58  ;;  %vm416_vm6 = vcmp.eq.s32.totalorder %v414_v13, 1  ;;  %v386_v58 = vld [vmem:[%s1194_s25 + $0x38] sm:$0xf0]  ;;  %vm1443_vm3 = vmand %vm1395_vm2, %vm240_vm7  ;;  %v325_v30 = vld [vmem:[%s1194_s25 + $0x20] sm:$0xf] }
  0x21   : > { %v459_v52 = vsel %vm451_vm9, %v454_v41, %v458_v35  ;;  %v452_v53 = vrot.slane %v431_v42, 4  ;;  %vm415_vm10 = vcmp.eq.s32.totalorder %v410_v14, 1  ;;  %881 = vmatpush1.msra.mxu0 %v538_v61  ;;  %v457_v55 = vsel %vm451_vm9, %v453_v49, %v456_v36  ;;  %481 = vst [vmem:[#allocation2 + $0x110] sm:$0xf0] %v453_v49  ;;  %vm1459_vm0 = vmand %vm1345_vm14, %vm238_vm5  ;;  %v344_v36 = vld [vmem:[%s1194_s25 + $0x20] sm:$0xf0] }
  0x22   : > { %v418_v56 = vsel %vm416_vm6, %v405_v43, 0.0  ;;  %v417_v13 = vsel %vm415_vm10, %v404_v44, 0.0  ;;  %v376_v9 = vrot.slane %v1216_v15, %v1178_v6  ;;  %882 = vmatprep.subr.mxu0 %v469_v0  ;;  %v387_v59 = vsel %vm1335_vm11, 1, %v1108_v8  ;;  %v307_v42 = vld [vmem:[%s1194_s25 + $0x18] sm:$0xf0]  ;;  %vm1471_vm5 = vmand %vm1345_vm14, %vm259_vm12 }
  0x23   : > { %v455_v51 = vsel %vm451_vm9, %v452_v53, %v454_v41  ;;  %480 = vst [vmem:[#allocation2 + $0x180] sm:$0xf0] %v452_v53  ;;  %420 = vst [vmem:[#allocation2 + $0x110] sm:$0xf] %v418_v56  ;;  %v372_v61 = vrot.slane %v1216_v15, %v1182_v7  ;;  %v327_v62 = vsel %vm1355_vm15, 1, %v1108_v8  ;;  %883 = vmatpush1.msra.mxu0 %v467_v40  ;;  %v346_v28 = vsel %vm1407_vm8, 1, %v1108_v8 }
  0x24   : > { %419 = vst [vmem:[#allocation2 + $0x180] sm:$0xf] %v417_v13  ;;  %vm1430_vm11 = vcmp.eq.s32.totalorder %v376_v9, 1  ;;  %v395_v15 = vrot.slane %v387_v59, %v1178_v6  ;;  %v391_v4 = vrot.slane %v387_v59, %v1182_v7  ;;  %v335_v16 = vrot.slane %v327_v62, %v1178_v6  ;;  %884 = vmatprep.subr.mxu0 %v465_v46  ;;  %v285_v41 = vld [vmem:[%s1194_s25 + $0x18] sm:$0xf]  ;;  %vm1491_vm12 = vmand %vm1459_vm0, %vm240_vm7 }
  0x25   : > { %v380_v24 = vsel %vm1430_vm11, %v367_v57, 0.0  ;;  %vm377_vm15 = vcmp.eq.s32.totalorder %v372_v61, 1  ;;  %v331_v31 = vrot.slane %v327_v62, %v1182_v7  ;;  %885 = vmatpush1.msra.mxu0 %v463_v47  ;;  %v354_v40 = vrot.slane %v346_v28, %v1178_v6  ;;  %v284_v47 = vld [vmem:[%s1194_s25 + $0x10] sm:$0xf]  ;;  %v1505_v56 = vld [vmem:[%s1194_s25 + $0x38] sm:$0xf0]  ;;  %vm1515_vm8 = vmand %vm1471_vm5, %vm261_vm13 }
  0x26   : > { %382 = vst [vmem:[#allocation2 + $0x48] sm:$0xf] %v380_v24  ;;  %vm397_vm1 = vcmp.eq.s32.totalorder %v395_v15, 1  ;;  %v379_v35 = vsel %vm377_vm15, %v366_v60, 0.0  ;;  %vm396_vm6 = vcmp.eq.s32.totalorder %v391_v4, 1  ;;  %vm337_vm10 = vcmp.eq.s32.totalorder %v335_v16, 1  ;;  %886 = vmatprep.subr.mxu0 %v461_v48 }
  0x27   : > { %v399_v37 = vsel %vm397_vm1, %v386_v58, 0.0  ;;  %381 = vst [vmem:[#allocation2 + $0x130] sm:$0xf] %v379_v35  ;;  %v398_v39 = vsel %vm396_vm6, %v385_v3, 0.0  ;;  %v339_v0 = vsel %vm337_vm10, %v326_v5, 0.0  ;;  %887 = vmatpush1.msra.mxu0 %v459_v52  ;;  %vm1475_vm2 = vcmp.eq.s32.totalorder %v331_v31, 1 }
  0x28   : > { %401 = vst [vmem:[#allocation2 + $0x48] sm:$0xf0] %v399_v37  ;;  %400 = vst [vmem:[#allocation2 + $0x130] sm:$0xf0] %v398_v39  ;;  %v350_v45 = vrot.slane %v346_v28, %v1182_v7  ;;  %v286_v32 = vsel %vm1426_vm4, 1, %v1108_v8  ;;  %v308_v46 = vsel %vm1443_vm3, 1, %v1108_v8  ;;  %888 = vmatprep.subr.mxu0 %v457_v55  ;;  %v1556_v58 = vmul.f32 %v1206_v11, %v1247_v26 }
  0x29   : > { %341 = vst [vmem:[#allocation2 + $0x168] sm:$0xf] %v339_v0  ;;  %vm1495_vm14 = vcmp.eq.s32.totalorder %v354_v40, 1  ;;  %v338_v50 = vsel %vm1475_vm2, %v325_v30, 0.0  ;;  %v294_v52 = vrot.slane %v286_v32, %v1178_v6  ;;  %v316_v53 = vrot.slane %v308_v46, %v1178_v6  ;;  %889 = vmatpush1.msra.mxu0 %v455_v51  ;;  %v765_v51 = vld [vmem:[%s1194_s25 + $0x48] sm:$0xf] }
  0x2a   : > { %v817_v13 = vld [vmem:[#allocation2 + $0x110] sm:$0xff]  ;;  %v358_v57 = vsel %vm1495_vm14, %v345_v25, 0.0  ;;  %340 = vst [vmem:[#allocation2 + $0x50] sm:$0xf] %v338_v50  ;;  %vm355_vm7 = vcmp.eq.s32.totalorder %v350_v45, 1  ;;  %v290_v9 = vrot.slane %v286_v32, %v1182_v7  ;;  %v312_v14 = vrot.slane %v308_v46, %v1182_v7 }
  0x2b   : > { %v816_v55 = vld [vmem:[#allocation2 + $0x180] sm:$0xff]  ;;  %v791_v59 = vld [vmem:[%s1194_s25 + $0x8] sm:$0xf]  ;;  %890 = vmatprep.subr.mxu0 %v817_v13  ;;  %360 = vst [vmem:[#allocation2 + $0x168] sm:$0xf0] %v358_v57  ;;  %v357_v60 = vsel %vm355_vm7, %v344_v36, 0.0 }
  0x2c   : > { %vm296_vm4 = vcmp.eq.s32.totalorder %v294_v52, 1  ;;  %vm318_vm11 = vcmp.eq.s32.totalorder %v316_v53, 1  ;;  %v243_v61 = vld [vmem:[%s1194_s25 + $0x8] sm:$0xf]  ;;  %v244_v2 = vsel %vm1491_vm12, 1, %v1108_v8  ;;  %891 = vmatpush1.msra.mxu0 %v816_v55  ;;  %vm295_vm13 = vcmp.eq.s32.totalorder %v290_v9, 1 }
  0x2d   : > { %v793_v62 = vld [vmem:[%s1194_s25 + $0x48] sm:$0xf]  ;;  %359 = vst [vmem:[#allocation2 + $0x50] sm:$0xf0] %v357_v60  ;;  %v298_v63 = vsel %vm296_vm4, %v285_v41, 0.0  ;;  %v320_v1 = vsel %vm318_vm11, %v307_v42, 0.0  ;;  %v252_v24 = vrot.slane %v244_v2, %v1178_v6  ;;  %v248_v35 = vrot.slane %v244_v2, %v1182_v7 }
  0x2e   : > { %vm317_vm3 = vcmp.eq.s32.totalorder %v312_v14, 1  ;;  %v264_v15 = vld [vmem:[%s1194_s25 + $0x8] sm:$0xf0]  ;;  %v242_v3 = vld [vmem:[%s1194_s25] sm:$0xf]  ;;  %v297_v16 = vsel %vm295_vm13, %v284_v47, 0.0  ;;  %v795_v44 = vmul.f32 %v793_v62, %v791_v59 }
  0x2f   : > { %v263_v4 = vld [vmem:[%s1194_s25] sm:$0xf0]  ;;  %v1530_v5 = vld [vmem:[%s1194_s25 + $0x30] sm:$0xf0]  ;;  %300 = vst [vmem:[#allocation2 + $0x18] sm:$0xf] %v298_v63 }
  0x30   : > { %322 = vst [vmem:[#allocation2 + $0x18] sm:$0xf0] %v320_v1  ;;  %v319_v23 = vsel %vm317_vm3, %v306_v54, 0.0  ;;  %v265_v25 = vsel %vm1515_vm8, 1, %v1108_v8  ;;  %v764_v28 = vld [vmem:[%s1194_s25 + $0x40] sm:$0xf] }
  0x31   : > { %v790_v30 = vld [vmem:[%s1194_s25] sm:$0xf]  ;;  %299 = vst [vmem:[#allocation2 + $0xd8] sm:$0xf] %v297_v16  ;;  %321 = vst [vmem:[#allocation2 + $0xd8] sm:$0xf0] %v319_v23  ;;  %v273_v33 = vrot.slane %v265_v25, %v1178_v6  ;;  %v269_v36 = vrot.slane %v265_v25, %v1182_v7 }
  0x32   : > { %v792_v31 = vld [vmem:[%s1194_s25 + $0x40] sm:$0xf]  ;;  %v773_v37 = vrot.slane %v1505_v56, 4  ;;  %v747_v39 = vld [vmem:[%s1194_s25 + $0x18] sm:$0xf]  ;;  %v815_v8 = vld [vmem:[#allocation2 + $0x48] sm:$0xff] }
  0x33   : > { %v751_v0 = vld [vmem:[%s1194_s25 + $0x48] sm:$0xf]  ;;  %v746_v40 = vld [vmem:[%s1194_s25 + $0x10] sm:$0xf]  ;;  %v750_v41 = vld [vmem:[%s1194_s25 + $0x40] sm:$0xf]  ;;  %892 = vmatprep.subr.mxu0 %v815_v8  ;;  %v794_v13 = vmul.f32 %v792_v31, %v790_v30  ;;  %v674_v31 = vmul.f32 %v1223_v17, %v1229_v19 }
  0x34   : > { %v814_v42 = vld [vmem:[#allocation2 + $0x130] sm:$0xff]  ;;  %vm254_vm15 = vcmp.eq.s32.totalorder %v252_v24, 1  ;;  %v774_v43 = vrot.slane %v765_v51, 4  ;;  %v770_v45 = vrot.slane %v1530_v5, 4  ;;  %v715_v6 = vld [vmem:[%s1194_s25 + $0x48] sm:$0xf]  ;;  %v755_v9 = vmul.f32 %v751_v0, %v747_v39 }
  0x35   : > { %v256_v32 = vsel %vm254_vm15, %v243_v61, 0.0  ;;  %vm275_vm0 = vcmp.eq.s32.totalorder %v273_v33, 1  ;;  %vm253_vm1 = vcmp.eq.s32.totalorder %v248_v35, 1  ;;  %vm274_vm6 = vcmp.eq.s32.totalorder %v269_v36, 1  ;;  %v714_v7 = vld [vmem:[%s1194_s25 + $0x40] sm:$0xf]  ;;  %893 = vmatpush1.msra.mxu0 %v814_v42 }
  0x36   : > { %258 = vst [vmem:[#allocation2 + $0x1b0] sm:$0xf] %v256_v32  ;;  %v277_v46 = vsel %vm275_vm0, %v264_v15, 0.0  ;;  %v255_v47 = vsel %vm253_vm1, %v242_v3, 0.0  ;;  %v276_v48 = vsel %vm274_vm6, %v263_v4, 0.0  ;;  %v775_v49 = vsel %vm451_vm9, %v773_v37, %v774_v43  ;;  %v813_v52 = vld [vmem:[#allocation2 + $0x168] sm:$0xff] }
  0x37   : > { %v711_v50 = vld [vmem:[%s1194_s25 + $0x28] sm:$0xf0]  ;;  %279 = vst [vmem:[#allocation2 + $0x1b0] sm:$0xf0] %v277_v46  ;;  %257 = vst [vmem:[#allocation2 + $0xb0] sm:$0xf] %v255_v47  ;;  %v779_v53 = vmul.f32 %v775_v49, %v1247_v26  ;;  %894 = vmatprep.subr.mxu0 %v813_v52  ;;  %v754_v14 = vmul.f32 %v750_v41, %v746_v40  ;;  %v1560_v51 = vmul.f32 %v1223_v17, %v1250_v27 }
  0x38   : > { %278 = vst [vmem:[#allocation2 + $0xb0] sm:$0xf0] %v276_v48  ;;  %v799_v54 = vrot.slane %v795_v44, 4  ;;  %v771_v56 = vrot.slane %v764_v28, 4  ;;  %v710_v55 = vld [vmem:[%s1194_s25 + $0x20] sm:$0xf0]  ;;  %v675_v24 = vmul.f32 %v1206_v11, %v1226_v18  ;;  %v673_v32 = vmul.f32 %v1203_v10, %v1247_v26 }
  0x39   : > { %v812_v57 = vld [vmem:[#allocation2 + $0x50] sm:$0xff]  ;;  %v665_v59 = vld [vmem:[%s1194_s25 + $0x28] sm:$0xf]  ;;  %v811_v61 = vld [vmem:[#allocation2 + $0x18] sm:$0xff]  ;;  %v783_v2 = vrot.slane %v779_v53, 4  ;;  %v798_v63 = vrot.slane %v794_v13, 4  ;;  %v624_v52 = vmul.f32 %v1229_v19, %v1272_v38 }
  0x3a   : > { %v671_v60 = vld [vmem:[%s1194_s25 + $0x48] sm:$0xf]  ;;  %895 = vmatpush1.msra.mxu0 %v812_v57  ;;  %803 = vst [vmem:[#allocation2 + $0xf0] sm:$0xf0] %v799_v54  ;;  %v772_v62 = vsel %vm451_vm9, %v770_v45, %v771_v56  ;;  %v730_v1 = vrot.slane %v715_v6, 4  ;;  %v810_v15 = vld [vmem:[#allocation2 + $0xd8] sm:$0xff] }
  0x3b   : > { %896 = vmatprep.subr.mxu0 %v811_v61  ;;  %v778_v3 = vmul.f32 %v772_v62, %v1250_v27  ;;  %759 = vst [vmem:[#allocation2 + $0x170] sm:$0xf] %v755_v9  ;;  %758 = vst [vmem:[#allocation2 + $0x88] sm:$0xf] %v754_v14  ;;  %v728_v4 = vrot.slane %v714_v7, 4  ;;  %v725_v5 = vrot.slane %v711_v50, 4  ;;  %v677_v25 = vmul.f32 %v671_v60, %v665_v59 }
  0x3c   : > { %v722_v16 = vrot.slane %v710_v55, 4  ;;  %897 = vmatpush1.msra.mxu0 %v810_v15  ;;  %789 = vst [vmem:[#allocation2 + $0xf0] ss:$132 sps:$4 sm:$0xff] %v783_v2   ;;  %802 = vst [vmem:[#allocation2 + $0x58] sm:$0xf0] %v798_v63  ;;  %v731_v23 = vsel %vm451_vm9, %v1232_v20, %v730_v1  ;;  %v688_v41 = vrot.slane %v675_v24, 4  ;;  %v672_v7 = vmul.f32 %v1209_v12, %v1250_v27 }
  0x3d   : > { %v664_v28 = vld [vmem:[%s1194_s25 + $0x20] sm:$0xf]  ;;  %v782_v33 = vrot.slane %v778_v3, 4  ;;  %v1575_v35 = vmul.f32 %v731_v23, %v1226_v18  ;;  %v729_v36 = vsel %vm451_vm9, %v1254_v29, %v728_v4  ;;  %v727_v37 = vsel %vm451_vm9, %v725_v5, %v1232_v20  ;;  %v593_v39 = vld [vmem:[%s1194_s25 + $0x48] sm:$0xf] }
  0x3e   : > { %v670_v30 = vld [vmem:[%s1194_s25 + $0x40] sm:$0xf]  ;;  %v1584_v11 = vmul.f32 %v729_v36, %v1229_v19  ;;  %v1587_v40 = vmul.f32 %v727_v37, %v1247_v26  ;;  %v724_v17 = vsel %vm451_vm9, %v722_v16, %v1254_v29  ;;  %v809_v8 = vld [vmem:[#allocation2 + $0x1b0] sm:$0xff]  ;;  %v692_v44 = vrot.slane %v677_v25, 4  ;;  %v589_v53 = vld [vmem:[%s1194_s25 + $0x18] sm:$0xf0] }
  0x3f   : > { %v592_v0 = vld [vmem:[%s1194_s25 + $0x40] sm:$0xf]  ;;  %v808_v42 = vld [vmem:[#allocation2 + $0xb0] sm:$0xff]  ;;  %788 = vst [vmem:[#allocation2 + $0x58] ss:$52 sps:$4 sm:$0xff] %v782_v33   ;;  %v1592_v43 = vmul.f32 %v724_v17, %v1250_v27  ;;  %v676_v45 = vmul.f32 %v670_v30, %v664_v28  ;;  %v686_v6 = vrot.slane %v674_v31, 4  ;;  %898 = vmatprep.subr.mxu0 %v809_v8  ;;  %v625_v50 = vmul.f32 %v1226_v18, %v1264_v34 }
  0x40   : > { %v614_v46 = vrot.slane %v593_v39, 4  ;;  %v612_v47 = vrot.slane %v592_v0, 4  ;;  %899 = vmatpush1.msra.mxu0 %v808_v42  ;;  %v693_v48 = vsel %vm451_vm9, %v688_v41, %v692_v44  ;;  %v588_v54 = vld [vmem:[%s1194_s25 + $0x10] sm:$0xf0]  ;;  %v1109_v56 = vmov 1.0  }
  0x41   : > { %v690_v49 = vrot.slane %v676_v45, 4  ;;  %908 = vmatprep.subr.mxu0 %v1109_v56  ;;  %v685_v13 = vrot.slane %v673_v32, 4  ;;  %v684_v55 = vrot.slane %v672_v7, 4  ;;  %v561_v14 = vld [vmem:[%s1194_s25 + $0x38] sm:$0xf]  ;;  %v638_v60 = vrot.slane %v625_v50, 4 }
  0x42   : > { %v615_v57 = vsel %vm451_vm9, %v1232_v20, %v614_v46  ;;  %v613_v9 = vsel %vm451_vm9, %v1254_v29, %v612_v47  ;;  %v565_v59 = vld [vmem:[%s1194_s25 + $0x48] sm:$0xf]  ;;  %909 = vmatpush2.msra.mxu0 %v1109_v56  ;;  %v560_v61 = vld [vmem:[%s1194_s25 + $0x30] sm:$0xf]  ;;  %v564_v2 = vld [vmem:[%s1194_s25 + $0x40] sm:$0xf] }
  0x43   : > { %v861_v18 = vld [vmem:[#allocation2 + $0xf0] sm:$0xff]  ;;  %v691_v19 = vsel %vm451_vm9, %v686_v6, %v690_v49  ;;  %v627_v34 = vmul.f32 %v615_v57, %v1203_v10  ;;  %v626_v38 = vmul.f32 %v613_v9, %v1209_v12  ;;  %v689_v62 = vsel %vm451_vm9, %v685_v13, %v688_v41  ;;  %701 = vst [vmem:[#allocation2 + $0x1a0] sm:$0xf0] %v685_v13 }
  0x44   : > { %910 = vmatprep.subr.mxu0 %v861_v18  ;;  %v687_v20 = vsel %vm451_vm9, %v684_v55, %v686_v6  ;;  %700 = vst [vmem:[#allocation2 + $0xd0] sm:$0xf0] %v684_v55  ;;  %v636_v29 = vrot.slane %v624_v52, 4  ;;  %v605_v63 = vrot.slane %v589_v53, 4  ;;  %v859_v1 = vld [vmem:[#allocation2 + $0x170] sm:$0xff]  ;;  %v602_v4 = vrot.slane %v588_v54, 4 }
  0x45   : > { %v642_v15 = vrot.slane %v627_v34, 4  ;;  %v640_v3 = vrot.slane %v626_v38, 4  ;;  %v573_v5 = vmul.f32 %v565_v59, %v561_v14  ;;  %v572_v23 = vmul.f32 %v564_v2, %v560_v61 }
  0x46   : > { %v860_v10 = vld [vmem:[#allocation2 + $0x58] sm:$0xff]  ;;  %v858_v16 = vld [vmem:[#allocation2 + $0x88] sm:$0xff]  ;;  %v607_v12 = vsel %vm451_vm9, %v605_v63, %v1235_v21  ;;  %v604_v30 = vsel %vm451_vm9, %v602_v4, %v1238_v22 }
  0x47   : > { %911 = vmatpush2.msra.mxu0 %v860_v10  ;;  %659 = vst [vmem:[#allocation2 + $0x1a0] sm:$0xf] %v642_v15  ;;  %658 = vst [vmem:[#allocation2 + $0xd0] sm:$0xf] %v640_v3  ;;  %v643_v24 = vsel %vm451_vm9, %v638_v60, %v642_v15  ;;  %v641_v25 = vsel %vm451_vm9, %v636_v29, %v640_v3  ;;  %v623_v28 = vmul.f32 %v607_v12, %v1247_v26 }
  0x48   : > { %581 = vst [vmem:[#allocation2 + $0x68] sm:$0xf] %v573_v5  ;;  %912 = vmatprep.subr.mxu0 %v859_v1  ;;  %v622_v31 = vmul.f32 %v604_v30, %v1250_v27  ;;  %580 = vst [vmem:[#allocation2] sm:$0xf] %v572_v23 }
  0x49   : > { %913 = vmatpush2.msra.mxu0 %v858_v16  ;;  %v635_v21 = vrot.slane %v623_v28, 4 }
  0x4a   : > { %914 = vmatprep.subr.mxu0 %v1556_v58  ;;  %v634_v33 = vrot.slane %v622_v31, 4 }
  0x4b   : > { %915 = vmatpush2.msra.mxu0 %v1560_v51  ;;  %v639_v36 = vsel %vm451_vm9, %v635_v21, %v638_v60  ;;  %653 = vst [vmem:[#allocation2 + $0x68] sm:$0xf0] %v635_v21 }
  0x4c   : > { %916 = vmatprep.subr.mxu0 %v1575_v35  ;;  %v637_v26 = vsel %vm451_vm9, %v634_v33, %v636_v29  ;;  %652 = vst [vmem:[#allocation2] sm:$0xf0] %v634_v33  ;;  %v806_v35 = vld [vmem:[%s1652_s2] sm:$0xff] }
  0x4d   : > { %917 = vmatpush2.msra.mxu0 %v1584_v11 }
  0x4e   : > { %918 = vmatprep.subr.mxu0 %v1587_v40  ;;  %v847_v22 = vld [vmem:[#allocation2 + $0x1a0] sm:$0xff]  ;;  %v846_v27 = vld [vmem:[#allocation2 + $0xd0] sm:$0xff] }
  0x4f   : > { %919 = vmatpush2.msra.mxu0 %v1592_v43 }
  0x50   : > { %920 = vmatprep.subr.mxu0 %v693_v48 }
  0x51   : > { %921 = vmatpush2.msra.mxu0 %v691_v19 }
  0x52   : > { %922 = vmatprep.subr.mxu0 %v689_v62  ;;  %v841_v58 = vld [vmem:[#allocation2 + $0x68] sm:$0xff] }
  0x53   : > { %923 = vmatpush2.msra.mxu0 %v687_v20  ;;  %v840_v51 = vld [vmem:[#allocation2] sm:$0xff] }
  0x54   : > { %924 = vmatprep.subr.mxu0 %v847_v22 }
  0x55   : > { %925 = vmatpush2.msra.mxu0 %v846_v27 }
  0x56   : > { %926 = vmatprep.subr.mxu0 %v643_v24 }
  0x57   : > { %927 = vmatpush2.msra.mxu0 %v641_v25 }
  0x58   : > { %928 = vmatprep.subr.mxu0 %v639_v36 }
  0x59   : > { %929 = vmatpush2.msra.mxu0 %v637_v26 }
  0x5a   : > { %930 = vmatprep.subr.mxu0 %v841_v58 }
  0x5b   : > { %931 = vmatpush2.msra.mxu0 %v840_v51 }
  0x5c   : > { %933 = vmatmul.mubr.f32.vlgmr.msra.gmra.mxu0 %v806_v35 }
 0x11c   : > { %v934_v37 = vpop.f32.mrf.mxu0 }
 0x11d   : > { %939 = vst [vmem:[%s230_s4] sm:$0xff] %v934_v37 }
 0x11e   : > { %v936_v39 = vpop.f32.mrf.mxu0 }
 0x11f   : > { %940 = vst [vmem:[%s230_s4 + $0x8] sm:$0xff] %v936_v39 }
 0x120 PF: > { %s13_s14 = sadd.s32 1, %s1106_s14   ;;  %s1694_s12 = smov %s1102_s13 }
 0x121   : > { %p10_p5 = scmp.ge.s32.totalorder %s13_s14, 4   ;;  %s1695_s13 = smov %s1697_s15 }
 0x123   :  { %12 = sbr.rel (!%p10_p5) target bundleno = 2 (0x2), region = 66 }

</bundles_post_ra>
